<compile_context>
chip_gen: v6e
topology: v6e:2x2x1
jax: 0.10.0
libtpu: 0.0.40
codegen_flags: <defaults>
</compile_context>

<pallas_src>
import jax
import jax.numpy as jnp
from jax.experimental import pallas as pl
from jax.experimental.pallas import tpu as pltpu


def _unit_actor_kernel(s_ref, c_ref, w_ref, b_ref, o_ref):
    # s: (B, S), c: (B, C), w: (S+C, A), b: (1, A) -> o: (B, A)
    # concat(s, c) @ W  ==  s @ W[:S] + c @ W[S:]
    S = s_ref.shape[1]
    acc = jnp.dot(s_ref[...], w_ref[:S, :], preferred_element_type=jnp.float32)
    acc = acc + jnp.dot(c_ref[...], w_ref[S:, :], preferred_element_type=jnp.float32)
    o_ref[...] = jnp.tanh(acc + b_ref[...])


_TILE_B = 256  # batch tile for the large-batch path (multiple of 8 sublanes)


def unit_actor_forward(s, c, w, b):
    """s: (B, S), c: (B, C), w: (S+C, A)  (PyTorch weight transposed), b: (A,) -> (B, A)"""
    B, S = s.shape
    C = c.shape[1]
    F = S + C
    A = w.shape[1]
    assert w.shape[0] == F, "weight must have shape (state_size + command_size, action_size)"

    s = s.astype(jnp.float32)
    c = c.astype(jnp.float32)
    w = w.astype(jnp.float32)
    b2 = b.reshape(1, A).astype(jnp.float32)

    if B >= _TILE_B and B % _TILE_B == 0:
        # Many environments/timesteps batched together: tile the batch dim so the
        # pipeline has real work per step; weights/bias are resident across the grid.
        tb = _TILE_B
        # TODO(synk): for production A (output features), pad/fuse heads to a multiple
        # of 128 lanes to avoid masked partial stores; A=16 here is kept exact.
        return pl.pallas_call(
            _unit_actor_kernel,
            out_shape=jax.ShapeDtypeStruct((B, A), jnp.float32),
            grid_spec=pltpu.PrefetchScalarGridSpec(
                num_scalar_prefetch=0,
                grid=(B // tb,),
                in_specs=[
                    pl.BlockSpec((tb, S), lambda i: (i, 0)),
                    pl.BlockSpec((tb, C), lambda i: (i, 0)),
                    pl.BlockSpec((F, A), lambda i: (0, 0)),
                    pl.BlockSpec((1, A), lambda i: (0, 0)),
                ],
                out_specs=pl.BlockSpec((tb, A), lambda i: (i, 0)),
            ),
            compiler_params=pltpu.CompilerParams(
                dimension_semantics=("parallel",)),  # shards batch across TCs on v7x
        )(s, c, w, b2)

    # Small-batch path: the whole problem fits in VMEM; no grid, no pipeline overhead.
    vmem = pl.BlockSpec(memory_space=pltpu.MemorySpace.VMEM)
    return pl.pallas_call(
        _unit_actor_kernel,
        out_shape=jax.ShapeDtypeStruct((B, A), jnp.float32),
        in_specs=[vmem, vmem, vmem, vmem],
        out_specs=vmem,
    )(s, c, w, b2)


def init_unit_actor_params(state_size, command_size, action_size, key):
    """Deterministic parameter init mirroring the PyTorch module.

    fc1.weight.data.uniform_(0.003, 0.003) -> constant 0.003, shape (A, S+C).
    fc1.bias keeps PyTorch Linear default: U(-1/sqrt(fan_in), 1/sqrt(fan_in)).
    Returned weight is transposed to (S+C, A) for the (B,F)@(F,A) kernel layout.
    """
    fan_in = state_size + command_size
    w_torch = jnp.full((action_size, fan_in), 0.003, dtype=jnp.float32)  # (A, S+C)
    bound = 1.0 / (fan_in ** 0.5)
    b = jax.random.uniform(key, (action_size,), minval=-bound, maxval=bound,
                           dtype=jnp.float32)
    return w_torch.T, b   # (S+C, A), (A,)


if __name__ == "__main__":
    key = jax.random.PRNGKey(0)
    k_s, k_c, k_b, k_s2, k_c2 = jax.random.split(key, 5)

    # Small shapes consistent with the module's forward:
    batch = 8
    state_size = 24
    command_size = 8
    action_size = 16

    s = jax.random.normal(k_s, (batch, state_size), dtype=jnp.float32)
    c = jax.random.normal(k_c, (batch, command_size), dtype=jnp.float32)
    w, b = init_unit_actor_params(state_size, command_size, action_size, k_b)

    # Small-batch (gridless) path.
    out = jax.block_until_ready(unit_actor_forward(s, c, w, b))
    ref = jnp.tanh(jnp.concatenate([s, c], axis=1) @ w + b[None, :])
    assert out.shape == (batch, action_size)
    assert jnp.allclose(out, ref, atol=1e-5, rtol=1e-5)

    # Large-batch (B-tiled, "parallel" grid) path.
    big_b = 512
    s2 = jax.random.normal(k_s2, (big_b, state_size), dtype=jnp.float32)
    c2 = jax.random.normal(k_c2, (big_b, command_size), dtype=jnp.float32)
    out2 = jax.block_until_ready(unit_actor_forward(s2, c2, w, b))
    ref2 = jnp.tanh(jnp.concatenate([s2, c2], axis=1) @ w + b[None, :])
    assert out2.shape == (big_b, action_size)
    assert jnp.allclose(out2, ref2, atol=1e-5, rtol=1e-5)

    print("KERNEL_OK")
</pallas_src>

<mosaic_0001>
module attributes {stable_mosaic.version = 11 : i64} {
  func.func @_unit_actor_kernel(%arg0: memref<8x24xf32, #tpu.memory_space<vmem>>, %arg1: memref<8x8xf32, #tpu.memory_space<vmem>>, %arg2: memref<32x16xf32, #tpu.memory_space<vmem>>, %arg3: memref<1x16xf32, #tpu.memory_space<vmem>>, %arg4: memref<8x16xf32, #tpu.memory_space<vmem>>) attributes {dimension_semantics = [], scalar_prefetch = 0 : i64, scratch_operands = 0 : i64, tpu.core_type = #tpu.core_type<tc>} {
    %c0 = arith.constant 0 : index
    %c0_0 = arith.constant 0 : index
    %0 = vector.load %arg0[%c0, %c0_0] : memref<8x24xf32, #tpu.memory_space<vmem>>, vector<8x24xf32>
    %c0_1 = arith.constant 0 : index
    %c0_2 = arith.constant 0 : index
    %1 = vector.load %arg2[%c0_1, %c0_2] : memref<32x16xf32, #tpu.memory_space<vmem>>, vector<24x16xf32>
    %cst = arith.constant dense<0.000000e+00> : vector<8x16xf32>
    %2 = tpu.matmul %0, %1, %cst {dimension_numbers = #tpu.dot_dimension_numbers<[1], [0], [0], [1], [0, 0, 1, 1], [], []>} : vector<8x24xf32>, vector<24x16xf32>, vector<8x16xf32> -> vector<8x16xf32>
    %c0_3 = arith.constant 0 : index
    %c0_4 = arith.constant 0 : index
    %3 = vector.load %arg1[%c0_3, %c0_4] : memref<8x8xf32, #tpu.memory_space<vmem>>, vector<8x8xf32>
    %c24 = arith.constant 24 : index
    %c0_5 = arith.constant 0 : index
    %4 = vector.load %arg2[%c24, %c0_5] : memref<32x16xf32, #tpu.memory_space<vmem>>, vector<8x16xf32>
    %cst_6 = arith.constant dense<0.000000e+00> : vector<8x16xf32>
    %5 = tpu.matmul %3, %4, %cst_6 {dimension_numbers = #tpu.dot_dimension_numbers<[1], [0], [0], [1], [0, 0, 1, 1], [], []>} : vector<8x8xf32>, vector<8x16xf32>, vector<8x16xf32> -> vector<8x16xf32>
    %6 = arith.addf %2, %5 : vector<8x16xf32>
    %c0_7 = arith.constant 0 : index
    %c0_8 = arith.constant 0 : index
    %7 = vector.load %arg3[%c0_7, %c0_8] : memref<1x16xf32, #tpu.memory_space<vmem>>, vector<1x16xf32>
    %8 = vector.broadcast %7 : vector<1x16xf32> to vector<8x16xf32>
    %9 = arith.addf %6, %8 : vector<8x16xf32>
    %10 = math.tanh %9 : vector<8x16xf32>
    %c0_9 = arith.constant 0 : index
    %c0_10 = arith.constant 0 : index
    %11 = vector.load %arg4[%c0_9, %c0_10] : memref<8x16xf32, #tpu.memory_space<vmem>>, vector<8x16xf32>
    tpu.vector_store %arg4[%c0_9, %c0_10], %10 {strides = array<i32>} : memref<8x16xf32, #tpu.memory_space<vmem>>, vector<8x16xf32>,
    return
  }
}

</mosaic_0001>

<bundles_post_ra>
// kernel: tpu_custom_call.1
= control target key start
LH: loop header
LB: loop body
LE: loop exit
PB: predicated region body
PF: predicated region fallthrough
CT: control target
= control target key end

     0   :  { %v247_v2 = vmov 0.0   ;;  %vm24_vm0 = vcmask 64512   ;;  %s299_s0 = inlined_call_operand.vmem [shape: f32[8,24], index: 0, kind: input, shape index: {}]   ;;  %s300_s1 = inlined_call_operand.vmem [shape: f32[8,8], index: 1, kind: input, shape index: {}]   ;;  %s301_s2 = inlined_call_operand.vmem [shape: f32[32,16], index: 2, kind: input, shape index: {}]   ;;  %s302_s3 = inlined_call_operand.vmem [shape: f32[1,16], index: 3, kind: input, shape index: {}]   ;;  %s303_s4 = inlined_call_operand.hbm [shape: f32[8,16], index: 4, kind: output, shape index: {}]  }
   0x1   :  { %v21_v0 = vld [vmem:[%s301_s2 + $0x10] sm:$0xff]  ;;  %v23_v1 = vld [vmem:[%s301_s2 + $0x18] sm:$0xff]  ;;  %211 = vmatprep.subr.mxu1 %v247_v2  ;;  %206 = vmatprep.subr.mxu0 %v247_v2  ;;  %v20_v3 = vld [vmem:[%s301_s2 + $0x8] sm:$0xff] }
   0x2   :  { %v22_v4 = vld [vmem:[%s300_s1] sm:$0xff]  ;;  %212 = vmatpush3.msra.mxu1 %v21_v0  ;;  %207 = vmatpush3.msra.mxu0 %v23_v1 }
   0x3   :  { %9 = vsyncpa [#allocation3], 0  ;;  %213 = vmatprep.subr.mxu1 %v247_v2  ;;  %vm248_vm1 = vmmov 0   ;;  %v19_v5 = vld [vmem:[%s301_s2] sm:$0xff]  ;;  %vm98_vm2 = vcmask 195584   ;;  %s249_s2 = smov [#allocation2]  }
   0x4   :  { %208 = vmatprep.mubr.msk.f32.mxu0 %vm248_vm1, %v247_v2  ;;  %214 = vmatpush3.msra.mxu1 %v20_v3  ;;  %v18_v6 = vld [vmem:[%s299_s0] sm:$0xff]  ;;  %s189_s28 = sshll.u32 %s249_s2, 4  ;;  %vm181_vm3 = vcmask 130048   ;;  %s190_s28 = int_to_ptr.vmem [resolvable:$true] %s189_s28 }
   0x5   :  { %209 = vmatmul.mubr.msk.f32.vlgmr.msra.gmra.mxu0 %vm24_vm0, %v22_v4  ;;  %215 = vmatprep.subr.mxu1 %v247_v2  ;;  %v199_v10 = vld [vmem:[%s302_s3] ss:$0 sm:$0xff]  ;;  %s225_s0 = scalar_lea.vmem %s190_s28, 128  ;;  %p230_p1 = scmp.lt.s32.totalorder %s190_s28, %s190_s28 }
   0x6   :  { %217 = vmatprep.mubr.msk.f32.mxu1 %vm248_vm1, %v247_v2  ;;  %216 = vmatpush3.msra.mxu1 %v19_v5  ;;  %p226_p0 = scmp.ne.s32.totalorder %s190_s28, %s225_s0  ;;  %p231_p2 = scmp.lt.s32.totalorder %s225_s0, %s225_s0 }
   0x7   :  { %218 = vmatmul.mubr.msk.f32.vlgmr.msra.gmra.mxu1 %vm98_vm2, %v18_v6 }
   0x8   :  { %p232_p3 = por %p231_p2, %p230_p1 }
   0xa   :  { %p233_p4 = pnand %p232_p3, %p226_p0 }
  0xc5   :  { %v94_v7 = vpop.f32.mrf.mxu0 }
  0xc7   :  { %v210_v8 = vpop.f32.mrf.mxu0  ;;  %v168_v9 = vpop.f32.mrf.mxu1 }
  0xc8   :  { %v169_v11 = vadd.f32 %v168_v9, %v94_v7 }
  0xc9   :  { %v219_v12 = vpop.f32.mrf.mxu1 }
  0xca   :  { %v179_v13 = vadd.f32 %v199_v10, %v169_v11 }
  0xcc   :  { %223 = vtanh.f32 %v179_v13 }
  0xd9   :  { %v224_v14 = vpop.eup %223 }
  0xda   :  { %182 = vst.msk [vmem:[#allocation2] sm:$0xff] %vm181_vm3, %v224_v14 }
  0xdb   :  { %236 = shalt.err (!%p233_p4)
}
  0xdc   :  { %192 = dma.vmem_to_hbm [thread:$0]  %s190_s28, 128, %s303_s4, [#allocation3]  }
  0xdd   :  { %245 = dma.done.wait [#allocation3], 128  }
  0xde   :  { %246 = vsyncadd [#allocation3], 4294967168 }
  0xdf   :  { %196 = vsyncpa [#allocation3], 1 }

</bundles_post_ra>
